<compile_context>
chip_gen: v7x
topology: tpu7x:2x2x1
jax: 0.10.0
libtpu: 0.0.40
codegen_flags: <defaults>
</compile_context>

<pallas_src>
import functools
import math

import jax
import jax.numpy as jnp
from jax.experimental import pallas as pl
from jax.experimental.pallas import tpu as pltpu


# ----------------------------------------------------------------------------
# Kernel 1: fused QKV projection, head split, scale fold.
# ----------------------------------------------------------------------------
def qkv_proj_kernel(x_ref, wq_ref, wk_ref, wv_ref, q_ref, k_ref, v_ref,
                    *, n_head, head_dim, scale, compute_dtype):
    x = x_ref[0].astype(compute_dtype)                       # (Tp, C)

    def project(w_ref, out_ref, fold_scale):
        # MXU matmul, f32 accumulation.
        y = jnp.dot(x, w_ref[...], preferred_element_type=jnp.float32)  # (Tp, C)
        if fold_scale:
            y = y * scale                                    # fold 1/sqrt(hd) into q
        # One-time head split (amortized O(T*C) relayout; keeps the attention
        # kernel's O(T^2) inner loop free of per-head lane slicing).
        for h in range(n_head):
            out_ref[0, h] = y[:, h * head_dim:(h + 1) * head_dim].astype(out_ref.dtype)

    project(wq_ref, q_ref, True)
    project(wk_ref, k_ref, False)
    project(wv_ref, v_ref, False)


# ----------------------------------------------------------------------------
# Kernel 2: flash attention (online softmax, heads batched) + output projection.
# ----------------------------------------------------------------------------
def flash_attn_kernel(mask_ref, q_ref, k_ref, v_ref, wproj_ref, bproj_ref,
                      o_ref, m_sc, l_sc, acc_sc,
                      *, compute_dtype, recip_approx):
    ki = pl.program_id(2)

    @pl.when(ki == 0)
    def _init():
        m_sc[...] = jnp.full(m_sc.shape, -jnp.inf, m_sc.dtype)
        l_sc[...] = jnp.zeros(l_sc.shape, l_sc.dtype)
        acc_sc[...] = jnp.zeros(acc_sc.shape, acc_sc.dtype)

    q = q_ref[0]                                             # (H, TQ, hd), scale folded
    k = k_ref[0]                                             # (H, TK, hd)
    v = v_ref[0]                                             # (H, TK, hd)

    # Head-batched scores on the MXU (f32 accumulation), + additive float mask.
    s = jnp.einsum("hqd,hkd->hqk", q, k,
                   preferred_element_type=jnp.float32)       # (H, TQ, TK)
    s = s + mask_ref[...][None, :, :]

    # Online (streaming) softmax statistics in f32.
    m_prev = m_sc[...]                                       # (H, TQ, 1)
    m_new = jnp.maximum(m_prev, jnp.max(s, axis=-1, keepdims=True))
    alpha = jnp.exp(m_prev - m_new)
    p = jnp.exp(s - m_new)                                   # (H, TQ, TK) f32
    l_sc[...] = alpha * l_sc[...] + jnp.sum(p, axis=-1, keepdims=True)
    acc_sc[...] = alpha * acc_sc[...] + jnp.einsum(
        "hqk,hkd->hqd", p.astype(compute_dtype), v,
        preferred_element_type=jnp.float32)                  # (H, TQ, hd)
    m_sc[...] = m_new

    @pl.when(ki == pl.num_programs(2) - 1)
    def _finalize():
        # Normalize (reciprocal on the EUP slot), merge heads, project, bias.
        inv_l = pl.reciprocal(l_sc[...], approx=recip_approx)
        ctx = acc_sc[...] * inv_l                            # (H, TQ, hd) f32
        n_head = ctx.shape[0]
        ctx2 = jnp.concatenate([ctx[h] for h in range(n_head)], axis=-1)  # (TQ, C)
        y = jnp.dot(ctx2.astype(compute_dtype), wproj_ref[...],
                    preferred_element_type=jnp.float32)      # (TQ, C)
        y = y + bproj_ref[...]
        o_ref[0] = y.astype(o_ref.dtype)                     # lane-dense (TQ, C) store


# ----------------------------------------------------------------------------
# Wrapper
# ----------------------------------------------------------------------------
def multi_head_attention(x, attn_mask, w_attn, w_proj, b_proj, n_head,
                         *, compute_dtype=jnp.bfloat16,
                         q_block=256, kv_block=512, proj_block=256,
                         vmem_limit_bytes=64 * 1024 * 1024):
    """x: (B,T,C) f32; attn_mask: (T,T) f32 additive; w_attn: (3C,C);
    w_proj: (C,C); b_proj: (C,)."""
    B, T, C = x.shape
    assert C % n_head == 0
    head_dim = C // n_head
    scale = 1.0 / math.sqrt(head_dim)

    q_block = min(q_block, T)
    kv_block = min(kv_block, T)
    proj_block = min(proj_block, T)
    assert T % q_block == 0 and T % kv_block == 0 and T % proj_block == 0

    # Split c_attn weight into the three projections, pre-transpose for x @ W^T,
    # and pre-cast weights to the compute dtype (halves their HBM/VMEM traffic).
    wq_t = jnp.transpose(w_attn[:C]).astype(compute_dtype)         # (C, C)
    wk_t = jnp.transpose(w_attn[C:2 * C]).astype(compute_dtype)    # (C, C)
    wv_t = jnp.transpose(w_attn[2 * C:]).astype(compute_dtype)     # (C, C)
    w_proj_t = jnp.transpose(w_proj).astype(compute_dtype)         # (C, C)
    b_proj2 = b_proj.reshape(1, C).astype(jnp.float32)
    attn_mask = attn_mask.astype(jnp.float32)

    # ---- Kernel 1: QKV projection -> (B, H, T, hd) in compute_dtype ----------
    qkv_shape = jax.ShapeDtypeStruct((B, n_head, T, head_dim), compute_dtype)
    qkv_spec = pl.BlockSpec((1, n_head, proj_block, head_dim),
                            lambda b, i: (b, 0, i, 0))
    q, k, v = pl.pallas_call(
        functools.partial(qkv_proj_kernel, n_head=n_head, head_dim=head_dim,
                          scale=scale, compute_dtype=compute_dtype),
        out_shape=(qkv_shape, qkv_shape, qkv_shape),
        grid=(B, T // proj_block),
        in_specs=[
            pl.BlockSpec((1, proj_block, C), lambda b, i: (b, i, 0)),   # x
            pl.BlockSpec((C, C), lambda b, i: (0, 0)),                  # Wq^T
            pl.BlockSpec((C, C), lambda b, i: (0, 0)),                  # Wk^T
            pl.BlockSpec((C, C), lambda b, i: (0, 0)),                  # Wv^T
        ],
        out_specs=(qkv_spec, qkv_spec, qkv_spec),
        compiler_params=pltpu.CompilerParams(
            dimension_semantics=("parallel", "parallel"),
            vmem_limit_bytes=vmem_limit_bytes),
    )(x, wq_t, wk_t, wv_t)

    # ---- Kernel 2: flash attention + fused output projection ----------------
    recip_approx = (compute_dtype != jnp.float32)
    out = pl.pallas_call(
        functools.partial(flash_attn_kernel, compute_dtype=compute_dtype,
                          recip_approx=recip_approx),
        out_shape=jax.ShapeDtypeStruct((B, T, C), x.dtype),
        grid=(B, T // q_block, T // kv_block),
        in_specs=[
            pl.BlockSpec((q_block, kv_block), lambda b, qi, ki: (qi, ki)),  # mask
            pl.BlockSpec((1, n_head, q_block, head_dim),
                         lambda b, qi, ki: (b, 0, qi, 0)),                  # q
            pl.BlockSpec((1, n_head, kv_block, head_dim),
                         lambda b, qi, ki: (b, 0, ki, 0)),                  # k
            pl.BlockSpec((1, n_head, kv_block, head_dim),
                         lambda b, qi, ki: (b, 0, ki, 0)),                  # v
            pl.BlockSpec((C, C), lambda b, qi, ki: (0, 0)),                 # Wproj^T
            pl.BlockSpec((1, C), lambda b, qi, ki: (0, 0)),                 # bias
        ],
        out_specs=pl.BlockSpec((1, q_block, C), lambda b, qi, ki: (b, qi, 0)),
        scratch_shapes=[
            pltpu.VMEM((n_head, q_block, 1), jnp.float32),          # running max
            pltpu.VMEM((n_head, q_block, 1), jnp.float32),          # running denom
            pltpu.VMEM((n_head, q_block, head_dim), jnp.float32),   # un-normed ctx
        ],
        compiler_params=pltpu.CompilerParams(
            dimension_semantics=("parallel", "parallel", "arbitrary"),
            vmem_limit_bytes=vmem_limit_bytes),
    )(attn_mask, q, k, v, w_proj_t, b_proj2)
    return out


# ----------------------------------------------------------------------------
# Pure-JAX reference mirroring the PyTorch forward.
# ----------------------------------------------------------------------------
def _reference(x, attn_mask, w_attn, w_proj, b_proj, n_head):
    B, T, C = x.shape
    hd = C // n_head
    qkv = jnp.einsum("btc,oc->bto", x, w_attn)               # Linear, no bias
    q, k, v = jnp.split(qkv, 3, axis=2)
    q = q.reshape(B, T, n_head, hd).transpose(0, 2, 1, 3)
    k = k.reshape(B, T, n_head, hd).transpose(0, 2, 1, 3)
    v = v.reshape(B, T, n_head, hd).transpose(0, 2, 1, 3)
    s = jnp.einsum("bhqd,bhkd->bhqk", q, k) / math.sqrt(hd) + attn_mask
    p = jax.nn.softmax(s, axis=-1)
    o = jnp.einsum("bhqk,bhkd->bhqd", p, v)
    o = o.transpose(0, 2, 1, 3).reshape(B, T, C)
    return jnp.einsum("btc,oc->bto", o, w_proj) + b_proj


if __name__ == "__main__":
    # Small config consistent with the module: n_embed=32, n_head=4, seq=8, batch=2
    B, T, C, n_head = 2, 8, 32, 4

    key = jax.random.PRNGKey(0)
    kx, kw1, kw2, kb = jax.random.split(key, 4)

    x = jax.random.normal(kx, (B, T, C), dtype=jnp.float32)
    w_attn = jax.random.normal(kw1, (3 * C, C), dtype=jnp.float32) * (1.0 / math.sqrt(C))
    w_proj = jax.random.normal(kw2, (C, C), dtype=jnp.float32) * (1.0 / math.sqrt(C))
    b_proj = jax.random.normal(kb, (C,), dtype=jnp.float32) * 0.01

    # Causal additive float mask (SDPA float-mask semantics).
    causal = jnp.tril(jnp.ones((T, T), dtype=bool))
    attn_mask = jnp.where(causal, 0.0, -1e9).astype(jnp.float32)

    ref = _reference(x, attn_mask, w_attn, w_proj, b_proj, n_head)

    # f32 path: tight accuracy check.
    out_f32 = multi_head_attention(x, attn_mask, w_attn, w_proj, b_proj, n_head,
                                   compute_dtype=jnp.float32)
    out_f32 = jax.block_until_ready(out_f32)
    assert out_f32.shape == (B, T, C)
    assert jnp.allclose(out_f32, ref, atol=1e-4, rtol=1e-4), "f32 mismatch vs reference"

    # bf16 MXU path (perf config for v6e/v7x): f32 softmax stats + accumulation.
    out_bf16 = multi_head_attention(x, attn_mask, w_attn, w_proj, b_proj, n_head,
                                    compute_dtype=jnp.bfloat16)
    out_bf16 = jax.block_until_ready(out_bf16)
    assert out_bf16.shape == (B, T, C)
    assert jnp.allclose(out_bf16, ref, atol=5e-2, rtol=5e-2), "bf16 mismatch vs reference"

    print("KERNEL_OK")
</pallas_src>

<mosaic_0001>
module attributes {stable_mosaic.version = 11 : i64} {
  func.func @qkv_proj_kernel(%arg0: i32, %arg1: i32, %arg2: memref<1x8x32xf32, #tpu.memory_space<vmem>>, %arg3: memref<32x32xf32, #tpu.memory_space<vmem>>, %arg4: memref<32x32xf32, #tpu.memory_space<vmem>>, %arg5: memref<32x32xf32, #tpu.memory_space<vmem>>, %arg6: memref<1x4x8x8xf32, #tpu.memory_space<vmem>>, %arg7: memref<1x4x8x8xf32, #tpu.memory_space<vmem>>, %arg8: memref<1x4x8x8xf32, #tpu.memory_space<vmem>>) attributes {dimension_semantics = [#tpu.dimension_semantics<parallel>, #tpu.dimension_semantics<parallel>], iteration_bounds = array<i64: 2, 1>, scalar_prefetch = 0 : i64, scratch_operands = 0 : i64, tpu.core_type = #tpu.core_type<tc>, window_params = [{transform_indices = @transform_0, window_bounds = array<i64: 1, 8, 32>}, {pipeline_mode = #tpu.pipeline_mode<synchronous>, transform_indices = @transform_1, window_bounds = array<i64: 32, 32>}, {pipeline_mode = #tpu.pipeline_mode<synchronous>, transform_indices = @transform_2, window_bounds = array<i64: 32, 32>}, {pipeline_mode = #tpu.pipeline_mode<synchronous>, transform_indices = @transform_3, window_bounds = array<i64: 32, 32>}, {transform_indices = @transform_4, window_bounds = array<i64: 1, 4, 8, 8>}, {transform_indices = @transform_5, window_bounds = array<i64: 1, 4, 8, 8>}, {transform_indices = @transform_6, window_bounds = array<i64: 1, 4, 8, 8>}]} {
    %c0 = arith.constant 0 : index
    %c0_0 = arith.constant 0 : index
    %c0_1 = arith.constant 0 : index
    %0 = vector.load %arg2[%c0, %c0_0, %c0_1] : memref<1x8x32xf32, #tpu.memory_space<vmem>>, vector<1x8x32xf32>
    %1 = vector.shape_cast %0 : vector<1x8x32xf32> to vector<8x32xf32>
    %c0_2 = arith.constant 0 : index
    %c0_3 = arith.constant 0 : index
    %2 = vector.load %arg3[%c0_2, %c0_3] : memref<32x32xf32, #tpu.memory_space<vmem>>, vector<32x32xf32>
    %cst = arith.constant dense<0.000000e+00> : vector<8x32xf32>
    %3 = tpu.matmul %1, %2, %cst {dimension_numbers = #tpu.dot_dimension_numbers<[1], [0], [0], [1], [0, 0, 1, 1], [], []>} : vector<8x32xf32>, vector<32x32xf32>, vector<8x32xf32> -> vector<8x32xf32>
    %cst_4 = arith.constant 0.353553385 : f32
    %4 = vector.broadcast %cst_4 : f32 to vector<8x32xf32>
    %5 = arith.mulf %3, %4 : vector<8x32xf32>
    %6 = vector.extract_strided_slice %5 {offsets = [0, 0], sizes = [8, 8], strides = [1, 1]} : vector<8x32xf32> to vector<8x8xf32>
    %c0_5 = arith.constant 0 : index
    %c0_6 = arith.constant 0 : index
    %c0_7 = arith.constant 0 : index
    %c0_8 = arith.constant 0 : index
    %7 = vector.load %arg6[%c0_5, %c0_6, %c0_7, %c0_8] : memref<1x4x8x8xf32, #tpu.memory_space<vmem>>, vector<1x1x8x8xf32>
    %8 = vector.shape_cast %7 : vector<1x1x8x8xf32> to vector<8x8xf32>
    %9 = vector.shape_cast %6 : vector<8x8xf32> to vector<1x1x8x8xf32>
    tpu.vector_store %arg6[%c0_5, %c0_6, %c0_7, %c0_8], %9 {strides = array<i32>} : memref<1x4x8x8xf32, #tpu.memory_space<vmem>>, vector<1x1x8x8xf32>,
    %10 = vector.extract_strided_slice %5 {offsets = [0, 8], sizes = [8, 8], strides = [1, 1]} : vector<8x32xf32> to vector<8x8xf32>
    %c0_9 = arith.constant 0 : index
    %c1 = arith.constant 1 : index
    %c0_10 = arith.constant 0 : index
    %c0_11 = arith.constant 0 : index
    %11 = vector.load %arg6[%c0_9, %c1, %c0_10, %c0_11] : memref<1x4x8x8xf32, #tpu.memory_space<vmem>>, vector<1x1x8x8xf32>
    %12 = vector.shape_cast %11 : vector<1x1x8x8xf32> to vector<8x8xf32>
    %13 = vector.shape_cast %10 : vector<8x8xf32> to vector<1x1x8x8xf32>
    tpu.vector_store %arg6[%c0_9, %c1, %c0_10, %c0_11], %13 {strides = array<i32>} : memref<1x4x8x8xf32, #tpu.memory_space<vmem>>, vector<1x1x8x8xf32>,
    %14 = vector.extract_strided_slice %5 {offsets = [0, 16], sizes = [8, 8], strides = [1, 1]} : vector<8x32xf32> to vector<8x8xf32>
    %c0_12 = arith.constant 0 : index
    %c2 = arith.constant 2 : index
    %c0_13 = arith.constant 0 : index
    %c0_14 = arith.constant 0 : index
    %15 = vector.load %arg6[%c0_12, %c2, %c0_13, %c0_14] : memref<1x4x8x8xf32, #tpu.memory_space<vmem>>, vector<1x1x8x8xf32>
    %16 = vector.shape_cast %15 : vector<1x1x8x8xf32> to vector<8x8xf32>
    %17 = vector.shape_cast %14 : vector<8x8xf32> to vector<1x1x8x8xf32>
    tpu.vector_store %arg6[%c0_12, %c2, %c0_13, %c0_14], %17 {strides = array<i32>} : memref<1x4x8x8xf32, #tpu.memory_space<vmem>>, vector<1x1x8x8xf32>,
    %18 = vector.extract_strided_slice %5 {offsets = [0, 24], sizes = [8, 8], strides = [1, 1]} : vector<8x32xf32> to vector<8x8xf32>
    %c0_15 = arith.constant 0 : index
    %c3 = arith.constant 3 : index
    %c0_16 = arith.constant 0 : index
    %c0_17 = arith.constant 0 : index
    %19 = vector.load %arg6[%c0_15, %c3, %c0_16, %c0_17] : memref<1x4x8x8xf32, #tpu.memory_space<vmem>>, vector<1x1x8x8xf32>
    %20 = vector.shape_cast %19 : vector<1x1x8x8xf32> to vector<8x8xf32>
    %21 = vector.shape_cast %18 : vector<8x8xf32> to vector<1x1x8x8xf32>
    tpu.vector_store %arg6[%c0_15, %c3, %c0_16, %c0_17], %21 {strides = array<i32>} : memref<1x4x8x8xf32, #tpu.memory_space<vmem>>, vector<1x1x8x8xf32>,
    %c0_18 = arith.constant 0 : index
    %c0_19 = arith.constant 0 : index
    %22 = vector.load %arg4[%c0_18, %c0_19] : memref<32x32xf32, #tpu.memory_space<vmem>>, vector<32x32xf32>
    %cst_20 = arith.constant dense<0.000000e+00> : vector<8x32xf32>
    %23 = tpu.matmul %1, %22, %cst_20 {dimension_numbers = #tpu.dot_dimension_numbers<[1], [0], [0], [1], [0, 0, 1, 1], [], []>} : vector<8x32xf32>, vector<32x32xf32>, vector<8x32xf32> -> vector<8x32xf32>
    %24 = vector.extract_strided_slice %23 {offsets = [0, 0], sizes = [8, 8], strides = [1, 1]} : vector<8x32xf32> to vector<8x8xf32>
    %c0_21 = arith.constant 0 : index
    %c0_22 = arith.constant 0 : index
    %c0_23 = arith.constant 0 : index
    %c0_24 = arith.constant 0 : index
    %25 = vector.load %arg7[%c0_21, %c0_22, %c0_23, %c0_24] : memref<1x4x8x8xf32, #tpu.memory_space<vmem>>, vector<1x1x8x8xf32>
    %26 = vector.shape_cast %25 : vector<1x1x8x8xf32> to vector<8x8xf32>
    %27 = vector.shape_cast %24 : vector<8x8xf32> to vector<1x1x8x8xf32>
    tpu.vector_store %arg7[%c0_21, %c0_22, %c0_23, %c0_24], %27 {strides = array<i32>} : memref<1x4x8x8xf32, #tpu.memory_space<vmem>>, vector<1x1x8x8xf32>,
    %28 = vector.extract_strided_slice %23 {offsets = [0, 8], sizes = [8, 8], strides = [1, 1]} : vector<8x32xf32> to vector<8x8xf32>
    %c0_25 = arith.constant 0 : index
    %c1_26 = arith.constant 1 : index
    %c0_27 = arith.constant 0 : index
    %c0_28 = arith.constant 0 : index
    %29 = vector.load %arg7[%c0_25, %c1_26, %c0_27, %c0_28] : memref<1x4x8x8xf32, #tpu.memory_space<vmem>>, vector<1x1x8x8xf32>
    %30 = vector.shape_cast %29 : vector<1x1x8x8xf32> to vector<8x8xf32>
    %31 = vector.shape_cast %28 : vector<8x8xf32> to vector<1x1x8x8xf32>
    tpu.vector_store %arg7[%c0_25, %c1_26, %c0_27, %c0_28], %31 {strides = array<i32>} : memref<1x4x8x8xf32, #tpu.memory_space<vmem>>, vector<1x1x8x8xf32>,
    %32 = vector.extract_strided_slice %23 {offsets = [0, 16], sizes = [8, 8], strides = [1, 1]} : vector<8x32xf32> to vector<8x8xf32>
    %c0_29 = arith.constant 0 : index
    %c2_30 = arith.constant 2 : index
    %c0_31 = arith.constant 0 : index
    %c0_32 = arith.constant 0 : index
    %33 = vector.load %arg7[%c0_29, %c2_30, %c0_31, %c0_32] : memref<1x4x8x8xf32, #tpu.memory_space<vmem>>, vector<1x1x8x8xf32>
    %34 = vector.shape_cast %33 : vector<1x1x8x8xf32> to vector<8x8xf32>
    %35 = vector.shape_cast %32 : vector<8x8xf32> to vector<1x1x8x8xf32>
    tpu.vector_store %arg7[%c0_29, %c2_30, %c0_31, %c0_32], %35 {strides = array<i32>} : memref<1x4x8x8xf32, #tpu.memory_space<vmem>>, vector<1x1x8x8xf32>,
    %36 = vector.extract_strided_slice %23 {offsets = [0, 24], sizes = [8, 8], strides = [1, 1]} : vector<8x32xf32> to vector<8x8xf32>
    %c0_33 = arith.constant 0 : index
    %c3_34 = arith.constant 3 : index
    %c0_35 = arith.constant 0 : index
    %c0_36 = arith.constant 0 : index
    %37 = vector.load %arg7[%c0_33, %c3_34, %c0_35, %c0_36] : memref<1x4x8x8xf32, #tpu.memory_space<vmem>>, vector<1x1x8x8xf32>
    %38 = vector.shape_cast %37 : vector<1x1x8x8xf32> to vector<8x8xf32>
    %39 = vector.shape_cast %36 : vector<8x8xf32> to vector<1x1x8x8xf32>
    tpu.vector_store %arg7[%c0_33, %c3_34, %c0_35, %c0_36], %39 {strides = array<i32>} : memref<1x4x8x8xf32, #tpu.memory_space<vmem>>, vector<1x1x8x8xf32>,
    %c0_37 = arith.constant 0 : index
    %c0_38 = arith.constant 0 : index
    %40 = vector.load %arg5[%c0_37, %c0_38] : memref<32x32xf32, #tpu.memory_space<vmem>>, vector<32x32xf32>
    %cst_39 = arith.constant dense<0.000000e+00> : vector<8x32xf32>
    %41 = tpu.matmul %1, %40, %cst_39 {dimension_numbers = #tpu.dot_dimension_numbers<[1], [0], [0], [1], [0, 0, 1, 1], [], []>} : vector<8x32xf32>, vector<32x32xf32>, vector<8x32xf32> -> vector<8x32xf32>
    %42 = vector.extract_strided_slice %41 {offsets = [0, 0], sizes = [8, 8], strides = [1, 1]} : vector<8x32xf32> to vector<8x8xf32>
    %c0_40 = arith.constant 0 : index
    %c0_41 = arith.constant 0 : index
    %c0_42 = arith.constant 0 : index
    %c0_43 = arith.constant 0 : index
    %43 = vector.load %arg8[%c0_40, %c0_41, %c0_42, %c0_43] : memref<1x4x8x8xf32, #tpu.memory_space<vmem>>, vector<1x1x8x8xf32>
    %44 = vector.shape_cast %43 : vector<1x1x8x8xf32> to vector<8x8xf32>
    %45 = vector.shape_cast %42 : vector<8x8xf32> to vector<1x1x8x8xf32>
    tpu.vector_store %arg8[%c0_40, %c0_41, %c0_42, %c0_43], %45 {strides = array<i32>} : memref<1x4x8x8xf32, #tpu.memory_space<vmem>>, vector<1x1x8x8xf32>,
    %46 = vector.extract_strided_slice %41 {offsets = [0, 8], sizes = [8, 8], strides = [1, 1]} : vector<8x32xf32> to vector<8x8xf32>
    %c0_44 = arith.constant 0 : index
    %c1_45 = arith.constant 1 : index
    %c0_46 = arith.constant 0 : index
    %c0_47 = arith.constant 0 : index
    %47 = vector.load %arg8[%c0_44, %c1_45, %c0_46, %c0_47] : memref<1x4x8x8xf32, #tpu.memory_space<vmem>>, vector<1x1x8x8xf32>
    %48 = vector.shape_cast %47 : vector<1x1x8x8xf32> to vector<8x8xf32>
    %49 = vector.shape_cast %46 : vector<8x8xf32> to vector<1x1x8x8xf32>
    tpu.vector_store %arg8[%c0_44, %c1_45, %c0_46, %c0_47], %49 {strides = array<i32>} : memref<1x4x8x8xf32, #tpu.memory_space<vmem>>, vector<1x1x8x8xf32>,
    %50 = vector.extract_strided_slice %41 {offsets = [0, 16], sizes = [8, 8], strides = [1, 1]} : vector<8x32xf32> to vector<8x8xf32>
    %c0_48 = arith.constant 0 : index
    %c2_49 = arith.constant 2 : index
    %c0_50 = arith.constant 0 : index
    %c0_51 = arith.constant 0 : index
    %51 = vector.load %arg8[%c0_48, %c2_49, %c0_50, %c0_51] : memref<1x4x8x8xf32, #tpu.memory_space<vmem>>, vector<1x1x8x8xf32>
    %52 = vector.shape_cast %51 : vector<1x1x8x8xf32> to vector<8x8xf32>
    %53 = vector.shape_cast %50 : vector<8x8xf32> to vector<1x1x8x8xf32>
    tpu.vector_store %arg8[%c0_48, %c2_49, %c0_50, %c0_51], %53 {strides = array<i32>} : memref<1x4x8x8xf32, #tpu.memory_space<vmem>>, vector<1x1x8x8xf32>,
    %54 = vector.extract_strided_slice %41 {offsets = [0, 24], sizes = [8, 8], strides = [1, 1]} : vector<8x32xf32> to vector<8x8xf32>
    %c0_52 = arith.constant 0 : index
    %c3_53 = arith.constant 3 : index
    %c0_54 = arith.constant 0 : index
    %c0_55 = arith.constant 0 : index
    %55 = vector.load %arg8[%c0_52, %c3_53, %c0_54, %c0_55] : memref<1x4x8x8xf32, #tpu.memory_space<vmem>>, vector<1x1x8x8xf32>
    %56 = vector.shape_cast %55 : vector<1x1x8x8xf32> to vector<8x8xf32>
    %57 = vector.shape_cast %54 : vector<8x8xf32> to vector<1x1x8x8xf32>
    tpu.vector_store %arg8[%c0_52, %c3_53, %c0_54, %c0_55], %57 {strides = array<i32>} : memref<1x4x8x8xf32, #tpu.memory_space<vmem>>, vector<1x1x8x8xf32>,
    return
  }
  func.func @transform_0(%arg0: i32, %arg1: i32) -> (i32, i32, i32) {
    %c0_i32 = arith.constant 0 : i32
    %c0_i32_0 = arith.constant 0 : i32
    return %arg0, %arg1, %c0_i32 : i32, i32, i32
  }
  func.func @transform_1(%arg0: i32, %arg1: i32) -> (i32, i32) {
    %c0_i32 = arith.constant 0 : i32
    %c0_i32_0 = arith.constant 0 : i32
    %c0_i32_1 = arith.constant 0 : i32
    return %c0_i32, %c0_i32_0 : i32, i32
  }
  func.func @transform_2(%arg0: i32, %arg1: i32) -> (i32, i32) {
    %c0_i32 = arith.constant 0 : i32
    %c0_i32_0 = arith.constant 0 : i32
    %c0_i32_1 = arith.constant 0 : i32
    return %c0_i32, %c0_i32_0 : i32, i32
  }
  func.func @transform_3(%arg0: i32, %arg1: i32) -> (i32, i32) {
    %c0_i32 = arith.constant 0 : i32
    %c0_i32_0 = arith.constant 0 : i32
    %c0_i32_1 = arith.constant 0 : i32
    return %c0_i32, %c0_i32_0 : i32, i32
  }
  func.func @transform_4(%arg0: i32, %arg1: i32) -> (i32, i32, i32, i32) {
    %c0_i32 = arith.constant 0 : i32
    %c0_i32_0 = arith.constant 0 : i32
    %c0_i32_1 = arith.constant 0 : i32
    return %arg0, %c0_i32, %arg1, %c0_i32_0 : i32, i32, i32, i32
  }
  func.func @transform_5(%arg0: i32, %arg1: i32) -> (i32, i32, i32, i32) {
    %c0_i32 = arith.constant 0 : i32
    %c0_i32_0 = arith.constant 0 : i32
    %c0_i32_1 = arith.constant 0 : i32
    return %arg0, %c0_i32, %arg1, %c0_i32_0 : i32, i32, i32, i32
  }
  func.func @transform_6(%arg0: i32, %arg1: i32) -> (i32, i32, i32, i32) {
    %c0_i32 = arith.constant 0 : i32
    %c0_i32_0 = arith.constant 0 : i32
    %c0_i32_1 = arith.constant 0 : i32
    return %arg0, %c0_i32, %arg1, %c0_i32_0 : i32, i32, i32, i32
  }
}

</mosaic_0001>

<bundles_post_ra>
// kernel: tpu_custom_call.1
= control target key start
LH: loop header
LB: loop body
LE: loop exit
PB: predicated region body
PF: predicated region fallthrough
CT: control target
= control target key end

     0   :  { %12 = vsyncpa [#allocation3], 0  ;;  %s1808_s0 = inlined_call_operand.hbm [shape: f32[2,8,32], index: 0, kind: input, shape index: {}]   ;;  %s1809_s1 = inlined_call_operand.hbm [shape: f32[32,32], index: 1, kind: input, shape index: {}]   ;;  %s1810_s2 = inlined_call_operand.hbm [shape: f32[32,32], index: 2, kind: input, shape index: {}]   ;;  %s1811_s3 = inlined_call_operand.hbm [shape: f32[32,32], index: 3, kind: input, shape index: {}]   ;;  %s1812_s4 = inlined_call_operand.hbm [shape: f32[2,4,8,8], index: 4, kind: output, shape index: {0}]   ;;  %s1813_s5 = inlined_call_operand.hbm [shape: f32[2,4,8,8], index: 5, kind: output, shape index: {1}]   ;;  %s1814_s6 = inlined_call_operand.hbm [shape: f32[2,4,8,8], index: 6, kind: output, shape index: {2}]  }
   0x1   :  { %14 = vsyncpa [#allocation3 + $0x1], 0 }
   0x2   :  { %15 = vsyncpa [#allocation6], 0 }
   0x3   :  { %16 = vsyncpa [#allocation9], 0 }
   0x4   :  { %17 = vsyncpa [#allocation4], 0 }
   0x5   :  { %19 = vsyncpa [#allocation4 + $0x1], 0 }
   0x6   :  { %20 = vsyncpa [#allocation12], 0 }
   0x7   :  { %22 = vsyncpa [#allocation12 + $0x1], 0  ;;  %s1407_s21 = smov 0   ;;  %s1409_s22 = smov 0  }
   0x8   :  { %s1411_s23 = smov 0   ;;  %s1413_s24 = smov 0  }
   0x9   :  { %s1415_s25 = smov 0   ;;  %s1417_s26 = smov 0  }
   0xa LB: > { %1821 = sst [smem:[#allocation19_spill]] %s1333_s21  ;;  %s1438_s27 = sadd.s32 4294967295, %s1353_s26   ;;  %s1353_s26 = sphi %s1417_s26, %s28_s26   ;;  %s1349_s25 = sphi %s1415_s25, %s1846_s25   ;;  %s1345_s24 = sphi %s1413_s24, %s1845_s24   ;;  %s1341_s23 = sphi %s1411_s23, %s1844_s23   ;;  %s1337_s22 = sphi %s1409_s22, %s1843_s22   ;;  %s1333_s21 = sphi %s1407_s21, %s1842_s21  }
   0xb   : > { %s1816_s28 = sadd.s32 4294967294, %s1353_s26   ;;  %p62_p0 = scmp.ne.s32.totalorder %s1337_s22, %s1333_s21 }
   0xc   : > { %p1815_p1 = scmp.eq.s32.totalorder %s1438_s27, 0  ;;  %p157_p3 = scmp.eq.s32.totalorder %s1816_s28, 1 }
   0xd   : > { %p869_p5 = scmp.ge.s32.totalorder %s1353_s26, 1  ;;  %p220_p7 = scmp.lt.s32.totalorder %s1353_s26, 3 }
   0xe   : > { %p1449_p4 = por %p1815_p1, %p62_p0  ;;  %p1454_p6 = por %p157_p3, %p62_p0 }
   0xf   : > { %p1459_p8 = pnand %p869_p5, %p220_p7  ;;  %s1355_s8 = smov [#allocation5]  }
  0x10   : > { %s1822_s29 = scalar_select %p1449_p4, 1, 0 }
  0x11   : > { %s1823_s30 = scalar_select %p1454_p6, 1, 0 }
  0x12   : > { %s1825_s7 = scalar_select %p1459_p8, 1, 0 }
  0x13   : > { %1824 = sst [smem:[#allocation20_spill]] %s1823_s30  ;;  %s232_s9 = sshll.u32 %s1355_s8, 4  ;;  %s1463_s9 = int_to_ptr.vmem [resolvable:$true] %s232_s9 }
  0x14   : > { %p996_p9 = pneg %p1459_p8  ;;  %s1356_s11 = smov [#allocation7]  }
  0x15   : > { %s245_s12 = sshll.u32 %s1356_s11, 4  ;;  %s1357_s13 = smov [#allocation8]   ;;  %s1474_s12 = int_to_ptr.vmem [resolvable:$true] %s245_s12 }
  0x16   : > { %p1470_p11 = pnand %p996_p9, %p1815_p1  ;;  %s1476_s14 = sshll.u32 %s1357_s13, 4  ;;  %s259_s14 = int_to_ptr.vmem [resolvable:$true] %s1476_s14 }
  0x17   : > { %s1089_s17 = scalar_lea.hbm %s1809_s1, 512 }
  0x18   : > { %p1090_p12 = scmp.ne.s32.totalorder %s1809_s1, %s1089_s17  ;;  %p1486_p13 = pneg %p1470_p11 }
  0x19   : > { %p1096_p5 = scmp.lt.u32.totalorder %s1089_s17, %s1809_s1 }
  0x1a   : > { %p1092_p0 = pnand %p1486_p13, %p1090_p12 }
  0x1c   : > { %p1093_p3 = pneg %p1092_p0 }
  0x1e   : > { %p1098_p7 = pnand %p1096_p5, %p1093_p3 }
  0x20   : > { %1101 = shalt.err (!%p1098_p7)
}
  0x21   : > { %s1102_s13 = scalar_lea.vmem %s1463_s9, 512  ;;  %p1110_p2 = scmp.lt.s32.totalorder %s1463_s9, %s1463_s9 }
  0x22   : > { %p1103_p9 = scmp.ne.s32.totalorder %s1463_s9, %s1102_s13  ;;  %p1111_p6 = scmp.lt.s32.totalorder %s1102_s13, %s1102_s13 }
  0x24   : > { %p1105_p10 = pnand %p1103_p9, %p1486_p13  ;;  %p1112_p12 = por %p1111_p6, %p1110_p2 }
  0x26   : > { %p1106_p1 = pneg %p1105_p10 }
  0x28   : > { %p1113_p0 = pnand %p1112_p12, %p1106_p1 }
  0x2a   : > { %1116 = shalt.err (!%p1113_p0)
}
  0x2b   : > { %s1358_s15 = smov 128   ;;  %s1359_s16 = smov 8  }
  0x2c   : > { %999 = dma.hbm_to_vmem [thread:$0]  (!%p1470_p11), %s1809_s1, 512, %s1463_s9, [#allocation6], %s1358_s15, %s1358_s15, %s1359_s16  }
  0x2d   : > { %s1117_s11 = scalar_lea.hbm %s1810_s2, 512 }
  0x2e   : > { %p1118_p1 = scmp.ne.s32.totalorder %s1810_s2, %s1117_s11  ;;  %p1124_p10 = scmp.lt.u32.totalorder %s1117_s11, %s1810_s2 }
  0x30   : > { %p1120_p2 = pnand %p1118_p1, %p1486_p13 }
  0x32   : > { %p1121_p6 = pneg %p1120_p2 }
  0x34   : > { %p1126_p3 = pnand %p1124_p10, %p1121_p6 }
  0x36   : > { %1129 = shalt.err (!%p1126_p3)
}
  0x37   : > { %s1130_s9 = scalar_lea.vmem %s1474_s12, 512  ;;  %p1138_p12 = scmp.lt.s32.totalorder %s1474_s12, %s1474_s12 }
  0x38   : > { %p1131_p5 = scmp.ne.s32.totalorder %s1474_s12, %s1130_s9  ;;  %p1139_p0 = scmp.lt.s32.totalorder %s1130_s9, %s1130_s9 }
  0x3a   : > { %p1133_p7 = pnand %p1131_p5, %p1486_p13  ;;  %p1140_p1 = por %p1139_p0, %p1138_p12 }
  0x3c   : > { %p1134_p9 = pneg %p1133_p7 }
  0x3e   : > { %p1141_p2 = pnand %p1140_p1, %p1134_p9 }
  0x40   : > { %1144 = shalt.err (!%p1141_p2)
}
  0x41   : > { %1002 = dma.hbm_to_vmem [thread:$0]  (!%p1470_p11), %s1810_s2, 512, %s1474_s12, [#allocation6], %s1358_s15, %s1358_s15, %s1359_s16  }
  0x42   : > { %s1145_s18 = scalar_lea.hbm %s1811_s3, 512 }
  0x43   : > { %p1146_p6 = scmp.ne.s32.totalorder %s1811_s3, %s1145_s18  ;;  %p1152_p5 = scmp.lt.u32.totalorder %s1145_s18, %s1811_s3 }
  0x45   : > { %p1148_p10 = pnand %p1146_p6, %p1486_p13 }
  0x47   : > { %p1149_p3 = pneg %p1148_p10 }
  0x49   : > { %p1154_p7 = pnand %p1152_p5, %p1149_p3 }
  0x4b   : > { %1157 = shalt.err (!%p1154_p7)
}
  0x4c   : > { %s1158_s9 = scalar_lea.vmem %s259_s14, 512  ;;  %p1166_p1 = scmp.lt.s32.totalorder %s259_s14, %s259_s14 }
  0x4d   : > { %p1159_p9 = scmp.ne.s32.totalorder %s259_s14, %s1158_s9  ;;  %p1167_p2 = scmp.lt.s32.totalorder %s1158_s9, %s1158_s9 }
  0x4f   : > { %p1161_p12 = pnand %p1159_p9, %p1486_p13  ;;  %p1168_p4 = por %p1167_p2, %p1166_p1 }
  0x51   : > { %p1162_p0 = pneg %p1161_p12 }
  0x53   : > { %p1169_p8 = pnand %p1168_p4, %p1162_p0 }
  0x55   : > { %1172 = shalt.err (!%p1169_p8)
}
  0x56   : > { %1005 = dma.hbm_to_vmem [thread:$0]  (!%p1470_p11), %s1811_s3, 512, %s259_s14, [#allocation9], %s1358_s15, %s1358_s15, %s1359_s16  }
  0x57   : > { %s49_s20 = sadd.s32 1, %s1341_s23  ;;  %s40_s10 = sadd.s32 1, %s1349_s25 }
  0x58   : > { %p56_p4 = scmp.ne.s32.totalorder %s1341_s23, %s1337_s22  ;;  %p42_p8 = scmp.ge.s32.totalorder %s40_s10, 2 }
  0x59   : > { %p57_p13 = scmp.eq.s32.totalorder %s1353_s26, 0  ;;  %p1828_p6 = scmp.eq.s32.totalorder %s1438_s27, 1 }
  0x5a   : > { %p1023_p3 = scmp.lt.s32.totalorder %s1353_s26, 2  ;;  %s1848_s10 = smov (%p42_p8, %s40_s10), 0 }
  0x5b   : > { %p1565_p10 = por %p1828_p6, %p56_p4  ;;  %p58_p5 = por %p57_p13, %p56_p4 }
  0x5c   : > { %s272_s30 = sand.u32 1, %s1341_s23   ;;  %s44_s17 = ssub.s32 %s1349_s25, %s1848_s10 }
  0x5d   : > { %p47_p7 = scmp.eq.s32.totalorder %s44_s17, 0  ;;  %s874_s14 = sshll.u32 %s272_s30, 3 }
  0x5e   : > { %s875_s15 = sshll.u32 %s1349_s25, 7  ;;  %s276_s11 = scalar_lea.vmem [#allocation2], %s874_s14 }
  0x5f   : > { %s1577_s16 = scalar_select %p47_p7, %s1341_s23, %s49_s20  }
  0x60   : > { %s1582_s8 = scalar_lea.hbm %s1808_s0, %s875_s15  ;;  %s284_s13 = sshll.u32 %s276_s11, 4  ;;  %s1584_s13 = int_to_ptr.vmem [resolvable:$true] %s284_s13 }
  0x61   : > { %p1588_p11 = pnand %p1023_p3, %p58_p5  ;;  %s273_s12 = scalar_lea.sflag [#allocation3], %s272_s30 }
  0x62   : > { %s1173_s21 = scalar_lea.hbm %s1582_s8, 128  ;;  %s1178_s14 = scalar_lea.hbm %s1808_s0, 256 }
  0x63   : > { %p1174_p9 = scmp.ne.s32.totalorder %s1582_s8, %s1173_s21  ;;  %p1175_p12 = pneg %p1588_p11 }
  0x64   : > { %p1179_p2 = scmp.lt.u32.totalorder %s1582_s8, %s1808_s0  ;;  %p1180_p4 = scmp.lt.u32.totalorder %s1178_s14, %s1173_s21 }
  0x65   : > { %p1176_p0 = pnand %p1175_p12, %p1174_p9  ;;  %p1182_p13 = scmp.lt.u32.totalorder %s1173_s21, %s1582_s8 }
  0x66   : > { %p1181_p8 = por %p1180_p4, %p1179_p2 }
  0x67   : > { %p1177_p1 = pneg %p1176_p0 }
  0x68   : > { %p1183_p6 = por %p1182_p13, %p1181_p8 }
  0x6a   : > { %p1184_p3 = pnand %p1183_p6, %p1177_p1 }
  0x6c   : > { %1187 = shalt.err (!%p1184_p3)
}
  0x6d   : > { %s1188_s30 = scalar_lea.vmem %s1584_s13, 128  ;;  %s1360_s19 = smov [#allocation2]  }
  0x6e   : > { %p1189_p5 = scmp.ne.s32.totalorder %s1584_s13, %s1188_s30  ;;  %s1193_s11 = sshll.u32 %s1360_s19, 4  ;;  %s1194_s11 = int_to_ptr.vmem [resolvable:$false] %s1193_s11 }
  0x6f   : > { %s1195_s20 = scalar_lea.vmem %s1194_s11, 256  ;;  %p1196_p0 = scmp.lt.s32.totalorder %s1584_s13, %s1194_s11 }
  0x70   : > { %p1191_p7 = pnand %p1189_p5, %p1175_p12  ;;  %p1197_p2 = scmp.lt.s32.totalorder %s1195_s20, %s1188_s30 }
  0x72   : > { %p1192_p9 = pneg %p1191_p7  ;;  %p1198_p4 = por %p1197_p2, %p1196_p0 }
  0x74   : > { %p1199_p8 = pnand %p1198_p4, %p1192_p9 }
  0x76   : > { %1202 = shalt.err (!%p1199_p8)
}
  0x77   : > { %1009 = dma.hbm_to_vmem [thread:$0]  (!%p1588_p11), %s1582_s8, 128, %s1584_s13, %s273_s12  }
  0x78   : > { %p1831_p1 = scmp.ne.s32.totalorder %s1825_s7, 0 }
  0x79   : > { %s1620_s21 = sand.u32 (!%p1831_p1), 1, %s1337_s22   ;;  %p1832_p12 = scmp.ne.s32.totalorder (!%p1831_p1), %s1822_s29, 0 }
  0x7a   : > { %293 = sbr.rel (%p1831_p1) target bundleno = 538 (0x21a), region = 36  ;;  %s877_s17 = sshll.u32 (!%p1831_p1), %s1620_s21, 3 }
  0x7b   : > { %s296_s14 = scalar_lea.sflag (!%p1831_p1), [#allocation3], %s1620_s21  ;;  %s1624_s15 = scalar_lea.vmem (!%p1831_p1), [#allocation2], %s877_s17 }
  0x81   : > { %1312 = dma.done.wait (%p1832_p12), %s296_s14, 128  }
  0x82   : > { %1314 = vsyncadd (%p1832_p12), %s296_s14, 4294967168  ;;  %p1833_p11 = scmp.eq.s32.totalorder %s1438_s27, 0 }
  0x84   : > { %1316 = dma.done.wait (%p1833_p11), [#allocation6], 1024   ;;  %p1834_p13 = pmov %p1833_p11 }
  0x85   : > { %p1835_p6 = pmov %p1833_p11 }
  0x86   : > { %1318 = vsyncadd (%p1834_p13), [#allocation6], 4294966272 }
  0x87   : > { %1320 = dma.done.wait (%p1835_p6), [#allocation9], 512   ;;  %p1836_p3 = pmov %p1835_p6 }
  0x88   : > { %v1361_v0 = vmov 0.0|0.0   ;;  %vm1362_vm0 = vmmov 0   ;;  %v1363_v1 = vmov 0.0   ;;  %v448_v2 = vld [vmem:[#allocation7] sm:$0xff]  ;;  %v449_v3 = vld [vmem:[#allocation7 + $0x8] sm:$0xff]  ;;  %v450_v7 = vld [vmem:[#allocation7 + $0x10] sm:$0xff] }
  0x89   : > { %1322 = vsyncadd (%p1836_p3), [#allocation9], 4294966784  ;;  %964 = vmatprep.subr.bf16.mxu1 %v1361_v0  ;;  %958 = vmatprep.subr.bf16.mxu0 %v1361_v0  ;;  %v351_v4 = vld [vmem:[#allocation5] sm:$0xff]  ;;  %v965_v5 = vpack.c.bf16 %v449_v3, %v448_v2  ;;  %v352_v6 = vld [vmem:[#allocation5 + $0x8] sm:$0xff]  ;;  %vm355_vm1 = vcmask 261120   ;;  %s881_s29 = sshll.u32 %s1620_s21, 5 }
  0x8a   : > { %944 = vmatprep.mubr.msk.f32.mxu1 %vm1362_vm0, %v1363_v1  ;;  %933 = vmatprep.mubr.msk.f32.mxu0 %vm1362_vm0, %v1363_v1  ;;  %v451_v8 = vld [vmem:[#allocation7 + $0x18] sm:$0xff]  ;;  %v959_v9 = vpack.c.bf16 %v352_v6, %v351_v4  ;;  %v353_v10 = vld [vmem:[#allocation5 + $0x10] sm:$0xff]  ;;  %v539_v14 = vld [vmem:[#allocation8] sm:$0xff]  ;;  %vm430_vm2 = vcmask 64512   ;;  %s1643_s7 = scalar_lea.vmem [#allocation11], %s881_s29  ;;  %s1364_s8 = smov 104  }
  0x8b   : > { %v354_v11 = vld [vmem:[#allocation5 + $0x18] sm:$0xff]  ;;  %966 = vmatpush3.bf16.msra.mxu1 %v965_v5  ;;  %v968_v12 = vpack.c.bf16 %v451_v8, %v450_v7  ;;  %v540_v15 = vld [vmem:[#allocation8 + $0x8] sm:$0xff]  ;;  %v541_v18 = vld [vmem:[#allocation8 + $0x10] sm:$0xff]  ;;  %s1365_s13 = smov 120   ;;  %s1647_s9 = scalar_lea.vmem [#allocation10], %s881_s29 }
  0x8c   : > { %960 = vmatpush3.bf16.msra.mxu0 %v959_v9  ;;  %967 = vmatprep.subr.bf16.mxu1 %v1361_v0  ;;  %v962_v13 = vpack.c.bf16 %v354_v11, %v353_v10  ;;  %v350_v16 = vld [vmem:[%s1624_s15] sm:$0xff]  ;;  %v971_v17 = vpack.c.bf16 %v540_v15, %v539_v14  ;;  %s1366_s12 = smov 112   ;;  %s1651_s18 = scalar_lea.vmem [#allocation13], %s881_s29 }
  0x8d   : > { %961 = vmatprep.subr.bf16.mxu0 %v1361_v0  ;;  %v542_v19 = vld [vmem:[#allocation8 + $0x18] sm:$0xff]  ;;  %s672_s30 = sshll.u32 %s1643_s7, 4  ;;  %s635_s19 = sand.u32 1, %s1438_s27   ;;  %s1660_s30 = int_to_ptr.vmem [resolvable:$true] %s672_s30 }
  0x8e   : > { %v974_v20 = vpack.c.bf16 %v542_v19, %v541_v18  ;;  %s1658_s11 = sshll.u32 %s1345_s24, 9  ;;  %s655_s20 = sshll.u32 %s1647_s9, 4  ;;  %s1673_s20 = int_to_ptr.vmem [resolvable:$true] %s655_s20 }
  0x8f   : > { %969 = vmatpush3.bf16.msra.mxu1 %v968_v12  ;;  %s1671_s27 = scalar_lea.hbm %s1813_s5, %s1658_s11  ;;  %s1679_s24 = scalar_lea.sflag [#allocation12], %s635_s19 }
  0x90   : > { %963 = vmatpush3.bf16.msra.mxu0 %v962_v13  ;;  %s1203_s15 = scalar_lea.vmem %s1660_s30, 512  ;;  %s1367_s29 = smov [#allocation11]  }
  0x91   : > { %970 = vmatprep.subr.bf16.mxu0 %v1361_v0  ;;  %p1204_p5 = scmp.ne.s32.totalorder %s1660_s30, %s1203_s15 }
  0x92   : > { %945 = vmatmul.mubr.msk.f32.vlgmr.msra.gmra.mrb[0].mxu1 %vm355_vm1, %v350_v16 }
  0x93   : > { %934 = vmatmul.mubr.msk.f32.vlgmr.msra.gmra.mrb[0].mxu0 %vm355_vm1, %v350_v16  ;;  %p1205_p7 = pnand %p1204_p5, %p1565_p10 }
  0x94   : > { %972 = vmatpush3.bf16.msra.mxu0 %v971_v17  ;;  %955 = vmatprep.mubr.msk.f32.mxu0 %vm1362_vm0, %v1363_v1 }
  0x95   : > { %973 = vmatprep.subr.bf16.mxu0 %v1361_v0  ;;  %p1206_p9 = pneg %p1205_p7 }
  0x98   : > { %975 = vmatpush3.bf16.msra.mxu0 %v974_v20 }
  0x9b   : > { %956 = vmatmul.mubr.msk.f32.vlgmr.msra.gmra.mrb[2].mxu0 %vm355_vm1, %v350_v16 }
 0x165   : > { %v518_v21 = vpop.f32.mrb[0].mxu1 }
 0x166   : > { %522 = vst.msk [vmem:[%s1643_s7] sm:$0xff] %vm430_vm2, %v518_v21  ;;  %534 = vrot.lane.b32.xlu1 %v518_v21, %s1364_s8  ;;  %524 = vrot.lane.b32.xlu0 %v518_v21, %s1365_s13  ;;  %v946_v22 = vpop.f32.mrb[1].mxu1  ;;  %v425_v23 = vpop.f32.mrb[0].mxu0 }
 0x167   : > { %v429_v24 = vmul.f32 0.35355338, %v425_v23  ;;  %v935_v25 = vpop.f32.mrb[1].mxu0 }
 0x169   : > { %431 = vst.msk [vmem:[%s1647_s9] sm:$0xff] %vm430_vm2, %v429_v24 }
 0x16a   : > { %529 = vrot.lane.b32.xlu0 %v518_v21, %s1366_s12  ;;  %433 = vrot.lane.b32.xlu1 %v429_v24, %s1365_s13 }
 0x16e   : > { %438 = vrot.lane.b32.xlu0 %v429_v24, %s1366_s12  ;;  %443 = vrot.lane.b32.xlu1 %v429_v24, %s1364_s8  ;;  %v609_v26 = vpop.f32.mrb[2].mxu0 }
 0x16f   : > { %613 = vst.msk [vmem:[%s1651_s18] sm:$0xff] %vm430_vm2, %v609_v26  ;;  %v957_v27 = vpop.f32.mrb[3].mxu0 }
 0x172   : > { %620 = vrot.lane.b32.xlu1 %v609_v26, %s1366_s12  ;;  %615 = vrot.lane.b32.xlu0 %v609_v26, %s1365_s13 }
 0x176   : > { %625 = vrot.lane.b32.xlu0 %v609_v26, %s1364_s8  ;;  %s1207_s8 = sshll.u32 %s1367_s29, 4  ;;  %s1208_s8 = int_to_ptr.vmem [resolvable:$false] %s1207_s8 }
 0x177   : > { %s1209_s13 = scalar_lea.vmem %s1208_s8, 1024  ;;  %p1210_p0 = scmp.lt.s32.totalorder %s1660_s30, %s1208_s8 }
 0x178   : > { %p1211_p2 = scmp.lt.s32.totalorder %s1209_s13, %s1203_s15 }
 0x17a   : > { %p1212_p4 = por %p1211_p2, %p1210_p0 }
 0x17c   : > { %p1213_p8 = pnand %p1212_p4, %p1206_p9 }
 0x1d8   : > { %v535_v28 = vpop.permute.xlu1 %534  ;;  %v525_v29 = vpop.permute.xlu0 %524 }
 0x1d9   : > { %891 = vst.msk [vmem:[%s1643_s7 + $0x18] sm:$0xff] %vm430_vm2, %v535_v28  ;;  %889 = vst.msk [vmem:[%s1643_s7 + $0x8] sm:$0xff] %vm430_vm2, %v525_v29 }
 0x1dc   : > { %v530_v30 = vpop.permute.xlu0 %529  ;;  %v434_v31 = vpop.permute.xlu1 %433 }
 0x1dd   : > { %890 = vst.msk [vmem:[%s1643_s7 + $0x10] sm:$0xff] %vm430_vm2, %v530_v30  ;;  %885 = vst.msk [vmem:[%s1647_s9 + $0x8] sm:$0xff] %vm430_vm2, %v434_v31 }
 0x1de   : > { %1216 = shalt.err (!%p1213_p8)
}
 0x1df   : > { %s1217_s7 = scalar_lea.hbm %s1671_s27, 512  ;;  %s1221_s17 = scalar_lea.hbm %s1813_s5, 1024 }
 0x1e0   : > { %p1218_p1 = scmp.ne.s32.totalorder %s1671_s27, %s1217_s7  ;;  %p1222_p13 = scmp.lt.u32.totalorder %s1671_s27, %s1813_s5 }
 0x1e1   : > { %p1223_p6 = scmp.lt.u32.totalorder %s1221_s17, %s1217_s7  ;;  %p1225_p5 = scmp.lt.u32.totalorder %s1217_s7, %s1671_s27 }
 0x1e2   : > { %p1219_p12 = pnand %p1218_p1, %p1565_p10 }
 0x1e3   : > { %p1224_p3 = por %p1223_p6, %p1222_p13 }
 0x1e4   : > { %p1220_p11 = pneg %p1219_p12 }
 0x1e5   : > { %p1226_p7 = por %p1225_p5, %p1224_p3 }
 0x1e7   : > { %p1227_p9 = pnand %p1226_p7, %p1220_p11 }
 0x1e9   : > { %1230 = shalt.err (!%p1227_p9)
}
 0x1ea   : > { %s1368_s15 = smov 128   ;;  %s1369_s8 = smov 8   ;;  %v439_v32 = vpop.permute.xlu0 %438  ;;  %v444_v33 = vpop.permute.xlu1 %443 }
 0x1eb   : > { %991 = dma.vmem_to_hbm [thread:$0]  (%p1565_p10), %s1660_s30, 512, %s1671_s27, %s1679_s24, %s1368_s15, %s1368_s15, %s1369_s8  }
 0x1ec   : > { %s1710_s12 = scalar_lea.hbm %s1812_s4, %s1658_s11  ;;  %886 = vst.msk [vmem:[%s1647_s9 + $0x10] sm:$0xff] %vm430_vm2, %v439_v32  ;;  %887 = vst.msk [vmem:[%s1647_s9 + $0x18] sm:$0xff] %vm430_vm2, %v444_v33  ;;  %s631_s19 = scalar_lea.sflag [#allocation4], %s1620_s21 }
 0x1ed   : > { %s1231_s17 = scalar_lea.vmem %s1673_s20, 512  ;;  %s1370_s14 = smov [#allocation10]  }
 0x1ee   : > { %p1232_p0 = scmp.ne.s32.totalorder %s1673_s20, %s1231_s17  ;;  %s1235_s29 = sshll.u32 %s1370_s14, 4  ;;  %s1236_s29 = int_to_ptr.vmem [resolvable:$false] %s1235_s29 }
 0x1ef   : > { %s1237_s30 = scalar_lea.vmem %s1236_s29, 1024  ;;  %p1238_p8 = scmp.lt.s32.totalorder %s1673_s20, %s1236_s29 }
 0x1f0   : > { %p1233_p2 = pnand %p1232_p0, %p1565_p10  ;;  %p1239_p1 = scmp.lt.s32.totalorder %s1237_s30, %s1231_s17 }
 0x1f2   : > { %p1234_p4 = pneg %p1233_p2  ;;  %p1240_p12 = por %p1239_p1, %p1238_p8 }
 0x1f4   : > { %p1241_p11 = pnand %p1240_p12, %p1234_p4 }
 0x1f6   : > { %1244 = shalt.err (!%p1241_p11)
}
 0x1f7   : > { %s1245_s9 = scalar_lea.hbm %s1710_s12, 512  ;;  %s1249_s7 = scalar_lea.hbm %s1812_s4, 1024 }
 0x1f8   : > { %p1246_p13 = scmp.ne.s32.totalorder %s1710_s12, %s1245_s9  ;;  %p1250_p5 = scmp.lt.u32.totalorder %s1710_s12, %s1812_s4 }
 0x1f9   : > { %p1251_p7 = scmp.lt.u32.totalorder %s1249_s7, %s1245_s9  ;;  %p1253_p0 = scmp.lt.u32.totalorder %s1245_s9, %s1710_s12 }
 0x1fa   : > { %p1247_p6 = pnand %p1246_p13, %p1565_p10 }
 0x1fb   : > { %p1252_p9 = por %p1251_p7, %p1250_p5 }
 0x1fc   : > { %p1248_p3 = pneg %p1247_p6 }
 0x1fd   : > { %p1254_p2 = por %p1253_p0, %p1252_p9 }
 0x1ff   : > { %p1255_p4 = pnand %p1254_p2, %p1248_p3 }
 0x201   : > { %1258 = shalt.err (!%p1255_p4)
}
 0x202   : > { %990 = dma.vmem_to_hbm [thread:$0]  (%p1565_p10), %s1673_s20, 512, %s1710_s12, %s631_s19, %s1368_s15, %s1368_s15, %s1369_s8   ;;  %v621_v34 = vpop.permute.xlu1 %620  ;;  %v616_v35 = vpop.permute.xlu0 %615 }
 0x203   : > { %s689_s17 = sshll.u32 %s1651_s18, 4  ;;  %894 = vst.msk [vmem:[%s1651_s18 + $0x10] sm:$0xff] %vm430_vm2, %v621_v34  ;;  %893 = vst.msk [vmem:[%s1651_s18 + $0x8] sm:$0xff] %vm430_vm2, %v616_v35  ;;  %s1754_s9 = scalar_lea.hbm %s1814_s6, %s1658_s11  ;;  %s1748_s17 = int_to_ptr.vmem [resolvable:$true] %s689_s17 }
 0x204   : > { %s1259_s20 = scalar_lea.vmem %s1748_s17, 512  ;;  %s1371_s12 = smov [#allocation13]  }
 0x205   : > { %p1260_p8 = scmp.ne.s32.totalorder %s1748_s17, %s1259_s20  ;;  %s1263_s19 = sshll.u32 %s1371_s12, 4  ;;  %s1264_s19 = int_to_ptr.vmem [resolvable:$false] %s1263_s19 }
 0x206   : > { %v626_v36 = vpop.permute.xlu0 %625  ;;  %s1265_s27 = scalar_lea.vmem %s1264_s19, 1024  ;;  %p1266_p11 = scmp.lt.s32.totalorder %s1748_s17, %s1264_s19 }
 0x207   : > { %895 = vst.msk [vmem:[%s1651_s18 + $0x18] sm:$0xff] %vm430_vm2, %v626_v36  ;;  %p1261_p1 = pnand %p1260_p8, %p1565_p10  ;;  %p1267_p13 = scmp.lt.s32.totalorder %s1265_s27, %s1259_s20 }
 0x209   : > { %p1262_p12 = pneg %p1261_p1  ;;  %p1268_p6 = por %p1267_p13, %p1266_p11 }
 0x20b   : > { %p1269_p3 = pnand %p1268_p6, %p1262_p12 }
 0x20d   : > { %1272 = shalt.err (!%p1269_p3)
}
 0x20e   : > { %s1273_s18 = scalar_lea.hbm %s1754_s9, 512  ;;  %s1277_s7 = scalar_lea.hbm %s1814_s6, 1024 }
 0x20f   : > { %p1274_p5 = scmp.ne.s32.totalorder %s1754_s9, %s1273_s18  ;;  %p1278_p0 = scmp.lt.u32.totalorder %s1754_s9, %s1814_s6 }
 0x210   : > { %p1279_p2 = scmp.lt.u32.totalorder %s1277_s7, %s1273_s18  ;;  %p1281_p8 = scmp.lt.u32.totalorder %s1273_s18, %s1754_s9 }
 0x211   : > { %p1275_p7 = pnand %p1274_p5, %p1565_p10 }
 0x212   : > { %p1280_p4 = por %p1279_p2, %p1278_p0 }
 0x213   : > { %p1276_p9 = pneg %p1275_p7 }
 0x214   : > { %p1282_p1 = por %p1281_p8, %p1280_p4 }
 0x216   : > { %p1283_p12 = pnand %p1282_p1, %p1276_p9 }
 0x218   : > { %1286 = shalt.err (!%p1283_p12)
}
 0x219   : > { %992 = dma.vmem_to_hbm [thread:$0]  (%p1565_p10), %s1748_s17, 512, %s1754_s9, %s1679_s24, %s1368_s15, %s1368_s15, %s1369_s8  }
 0x21a PF: > { %s1837_s30 = sld [smem:[#allocation19_spill]]  ;;  %s1838_s21 = sld [smem:[#allocation20_spill]] }
 0x21b   : > { %p1840_p13 = scmp.ge.s32.totalorder %s1353_s26, 2 }
 0x220   : > { %s704_s20 = sand.u32 1, %s1837_s30   ;;  %p1839_p11 = scmp.ne.s32.totalorder %s1838_s21, 0 }
 0x221   : > { %s705_s12 = scalar_lea.sflag [#allocation4], %s704_s20 }
 0x222   : > { %p1011_p6 = pnand %p1840_p13, %p1839_p11 }
 0x224   : > { %1324 = dma.done.wait (!%p1011_p6), %s705_s12, 512  }
 0x225   : > { %1326 = vsyncadd (!%p1011_p6), %s705_s12, 4294966784  ;;  %s1841_s28 = sadd.s32 4294967294, %s1353_s26  }
 0x226   : > { %s713_s19 = sand.u32 1, %s1841_s28  }
 0x227   : > { %s714_s27 = scalar_lea.sflag [#allocation12], %s713_s19 }
 0x228   : > { %1328 = dma.done.wait (!%p1011_p6), %s714_s27, 1024  }
 0x229   : > { %1330 = vsyncadd (!%p1011_p6), %s714_s27, 4294966272  ;;  %s28_s26 = sadd.s32 1, %s1353_s26   ;;  %s1842_s21 = smov %s1337_s22 }
 0x22a   : > { %p25_p10 = scmp.ge.s32.totalorder %s28_s26, 4   ;;  %s1843_s22 = smov %s1341_s23 }
 0x22b   : > { %s1844_s23 = smov %s1577_s16  ;;  %s1845_s24 = smov %s1349_s25 }
 0x22c   : > { %s1846_s25 = smov %s1848_s10  ;;  %27 = sbr.rel (!%p25_p10) target bundleno = 10 (0xa), region = 134 }
 0x233   :  { %728 = vsyncpa [#allocation3], 1 }
 0x234   :  { %730 = vsyncpa [#allocation3 + $0x1], 1 }
 0x235   :  { %731 = vsyncpa [#allocation6], 1 }
 0x236   :  { %732 = vsyncpa [#allocation9], 1 }
 0x237   :  { %733 = vsyncpa [#allocation4], 1 }
 0x238   :  { %735 = vsyncpa [#allocation4 + $0x1], 1 }
 0x239   :  { %736 = vsyncpa [#allocation12], 1 }
 0x23a   :  { %738 = vsyncpa [#allocation12 + $0x1], 1 }

</bundles_post_ra>
